<compile_context>
chip_gen: v6e
topology: v6e:2x2x1
jax: 0.10.0
libtpu: 0.0.40
codegen_flags: <defaults>
</compile_context>

<pallas_src>
import functools
import math

import jax
import jax.numpy as jnp
from jax import lax
from jax.experimental import pallas as pl
from jax.experimental.pallas import tpu as pltpu

_LANE = 128


def _round_up(n, m):
    return ((n + m - 1) // m) * m


def _pad2(w, rows, cols):
    return jnp.pad(w, ((0, rows - w.shape[0]), (0, cols - w.shape[1])))


def _attention_kernel(x_ref, wqkv_ref, bqkv_ref, wf_ref, bf_ref, out_ref,
                      attn_ref=None, *, seq_len, d_k_p):
    """One grid step == one block of BB batch elements (BB*S fused rows).

    x_ref    : (BB*S, D_in)        VMEM f32 (cast to compute dtype in-kernel)
    wqkv_ref : (D_in, 2*dkp+dvp)   VMEM compute dtype (constant across grid)
    bqkv_ref : (1, 2*dkp+dvp)      VMEM f32
    wf_ref   : (dvp, dmp)          VMEM compute dtype
    bf_ref   : (1, dmp)            VMEM f32
    out_ref  : (BB*S, dmp)         VMEM
    attn_ref : (BB, S, S)          VMEM (optional)
    """
    rows = x_ref.shape[0]
    nqkv = wqkv_ref.shape[1]
    d_v_p = nqkv - 2 * d_k_p
    S = seq_len
    BB = rows // S
    cdt = wqkv_ref.dtype

    # ---- Fused Q|K|V projection: one MXU matmul on the (BB*S, D_in) slab,
    #      f32 accumulation, biases added in f32.  (1/sqrt(d_k) is already
    #      folded into the query columns of wqkv/bqkv.)
    x2d = x_ref[...].astype(cdt)
    qkv = jnp.dot(x2d, wqkv_ref[...],
                  preferred_element_type=jnp.float32) + bqkv_ref[...]

    # Lane-tile-aligned slices (d_k_p, d_v_p are multiples of 128).
    q = qkv[:, :d_k_p].astype(cdt).reshape(BB, S, d_k_p)
    k = qkv[:, d_k_p:2 * d_k_p].astype(cdt).reshape(BB, S, d_k_p)
    v = qkv[:, 2 * d_k_p:].astype(cdt).reshape(BB, S, d_v_p)

    # ---- Scores: batched dot_general contracting the last axes (no K
    #      transpose is ever materialized).
    s = lax.dot_general(q, k, (((2,), (2,)), ((0,), (0,))),
                        preferred_element_type=jnp.float32)       # (BB, S, S)

    # ---- Numerically-stable softmax in f32.  Keep only two O(S^2) f32 values
    #      live (s -> exp in place, then one multiply).  The reciprocal is
    #      exact and taken on the (BB,S,1) row-sum only, so the returned
    #      attention rows sum to 1 at f32 precision.
    s = s - jnp.max(s, axis=-1, keepdims=True)
    s = jnp.exp(s)
    inv_den = 1.0 / jnp.sum(s, axis=-1, keepdims=True)
    attn = s * inv_den                                             # (BB, S, S) f32

    # ---- Context (batched) and final projection on the flattened slab.
    ctx = lax.dot_general(attn.astype(cdt), v, (((2,), (1,)), ((0,), (0,))),
                          preferred_element_type=jnp.float32)      # (BB, S, dvp)
    out = jnp.dot(ctx.astype(cdt).reshape(rows, d_v_p), wf_ref[...],
                  preferred_element_type=jnp.float32) + bf_ref[...]

    out_ref[...] = out.astype(out_ref.dtype)
    if attn_ref is not None:
        attn_ref[...] = attn.astype(attn_ref.dtype)


def _vmem_capacity_bytes():
    """Generation-aware VMEM capacity; conservative (v7x) fallback."""
    try:
        cap = getattr(pltpu.get_tpu_info(), "vmem_capacity_bytes", None)
        if cap:
            return int(cap)
    except Exception:
        pass
    return 64 * 1024 * 1024


def attention_network(x, params, *, compute_dtype=jnp.bfloat16, out_dtype=None,
                      attn_dtype=jnp.float32, return_attn=True, batch_block=None):
    """x: (B, S, D_in) float32.

    Returns (output (B, S, d_model), attn (B, S, S)) if return_attn else output.
    """
    B, S, D_in = x.shape
    wq, bq, wk, bk, wv, bv, wf, bf = params
    d_k, d_v, d_model = wq.shape[1], wv.shape[1], wf.shape[1]
    out_dt = x.dtype if out_dtype is None else out_dtype

    # ---- Pad projection output dims to lane multiples (exact-zero padding,
    #      semantics preserved), fold 1/sqrt(d_k) into the query projection,
    #      and fuse Q|K|V weights/biases into single wide tensors.
    d_k_p = _round_up(d_k, _LANE)
    d_v_p = _round_up(d_v, _LANE)
    d_model_p = _round_up(d_model, _LANE)
    nqkv = 2 * d_k_p + d_v_p
    scale = 1.0 / math.sqrt(d_k)

    wqkv = jnp.concatenate([_pad2(wq * scale, D_in, d_k_p),
                            _pad2(wk, D_in, d_k_p),
                            _pad2(wv, D_in, d_v_p)], axis=1)
    bqkv = jnp.concatenate([_pad2(bq * scale, 1, d_k_p),
                            _pad2(bk, 1, d_k_p),
                            _pad2(bv, 1, d_v_p)], axis=1)
    wf_p = _pad2(wf, d_v_p, d_model_p)
    bf_p = _pad2(bf, 1, d_model_p)

    wqkv_c = wqkv.astype(compute_dtype)
    wf_c = wf_p.astype(compute_dtype)
    bqkv_c = bqkv.astype(jnp.float32)
    bf_c = bf_p.astype(jnp.float32)

    # x flattened in the wrapper (free layout plumbing); kept f32 so the row
    # block stays natively (8,128)-tiled; cast to compute dtype in-kernel.
    x2d = x.astype(jnp.float32).reshape(B * S, D_in)

    # ---- Generation-aware VMEM budget and batch-block sizing: pick the
    #      LARGEST BB that fits, while keeping >= 2 grid steps (v7x megacore).
    vmem_cap = _vmem_capacity_bytes()
    vmem_budget = int(vmem_cap * 0.45)
    vmem_limit = int(vmem_cap * 0.9)

    isz_c = jnp.dtype(compute_dtype).itemsize
    isz_o = jnp.dtype(out_dt).itemsize
    isz_a = jnp.dtype(attn_dtype).itemsize

    def vmem_estimate(bb):
        rows = bb * S
        blk = 2 * rows * D_in * 4                      # x block, double buffered
        blk += 2 * rows * d_model_p * isz_o            # out block, double buffered
        if return_attn:
            blk += 2 * bb * S * S * isz_a              # attn block, double buffered
        wts = 2 * ((D_in * nqkv + d_v_p * d_model_p) * isz_c + (nqkv + d_model_p) * 4)
        tmp = rows * nqkv * (4 + isz_c)                # qkv f32 + q/k/v casts
        tmp += 2 * bb * S * S * 4                      # scores / exp (f32)
        tmp += bb * S * S * isz_c                      # attn cast for ctx matmul
        tmp += rows * d_v_p * (4 + isz_c)              # ctx
        tmp += rows * d_model_p * 4                    # out accumulator f32
        return blk + wts + tmp

    def pick_batch_block():
        divisors = [d for d in range(1, B + 1) if B % d == 0]
        # Row blocks must be sublane-aligned (multiple of 8 rows) unless full.
        aligned = [d for d in divisors if (d * S) % 8 == 0 or d == B]
        # Prefer >= 2 grid steps so the second TensorCore (v7x) is used.
        pool = [d for d in aligned if B // d >= 2] or aligned
        fitting = [d for d in pool if vmem_estimate(d) <= vmem_budget]
        return max(fitting) if fitting else min(pool)

    BB = pick_batch_block() if batch_block is None else batch_block
    assert B % BB == 0, "batch_block must divide B"
    assert (BB * S) % 8 == 0 or BB == B, "batch_block*S must be a multiple of 8"

    kernel = functools.partial(_attention_kernel, seq_len=S, d_k_p=d_k_p)

    def run(const_pipeline_mode):
        def const_spec(shape):
            idx = lambda b, _n=len(shape): (0,) * _n
            if const_pipeline_mode is None:
                return pl.BlockSpec(shape, idx)
            return pl.BlockSpec(shape, idx, pipeline_mode=const_pipeline_mode)

        in_specs = [
            pl.BlockSpec((BB * S, D_in), lambda b: (b, 0)),        # x rows
            const_spec((D_in, nqkv)), const_spec((1, nqkv)),       # fused QKV
            const_spec((d_v_p, d_model_p)), const_spec((1, d_model_p)),  # fc
        ]
        out_specs = [pl.BlockSpec((BB * S, d_model_p), lambda b: (b, 0))]
        out_shapes = [jax.ShapeDtypeStruct((B * S, d_model_p), out_dt)]
        if return_attn:
            out_specs.append(pl.BlockSpec((BB, S, S), lambda b: (b, 0, 0)))
            out_shapes.append(jax.ShapeDtypeStruct((B, S, S), attn_dtype))

        grid_spec = pltpu.PrefetchScalarGridSpec(
            num_scalar_prefetch=0,
            grid=(B // BB,),
            in_specs=in_specs,
            out_specs=out_specs,
        )
        return pl.pallas_call(
            kernel,
            out_shape=tuple(out_shapes),
            grid_spec=grid_spec,
            compiler_params=pltpu.CompilerParams(
                dimension_semantics=("parallel",),
                vmem_limit_bytes=vmem_limit),
        )(x2d, wqkv_c, bqkv_c, wf_c, bf_c)

    try:
        # Single-buffer the constant weight/bias blocks (frees VMEM for BB).
        results = run(pl.Buffered(1))
    except Exception:
        # Older JAX without BlockSpec pipeline_mode support: default buffering.
        results = run(None)

    out = results[0].reshape(B, S, d_model_p)[..., :d_model]
    if return_attn:
        return out, results[1]
    return out


def init_params(key, input_dim, d_k, d_v, d_model):
    """Deterministic nn.Linear-style init; weights stored as (in, out)."""
    ks = jax.random.split(key, 8)

    def linear(kw, kb, fan_in, fan_out):
        bound = 1.0 / math.sqrt(fan_in)
        w = jax.random.uniform(kw, (fan_in, fan_out), jnp.float32, -bound, bound)
        b = jax.random.uniform(kb, (1, fan_out), jnp.float32, -bound, bound)
        return w, b

    wq, bq = linear(ks[0], ks[1], input_dim, d_k)
    wk, bk = linear(ks[2], ks[3], input_dim, d_k)
    wv, bv = linear(ks[4], ks[5], input_dim, d_v)
    wf, bf = linear(ks[6], ks[7], d_v, d_model)
    return (wq, bq, wk, bk, wv, bv, wf, bf)


def _reference(x, params):
    """Pure-JAX f32 reference mirroring the PyTorch forward (mask=None)."""
    wq, bq, wk, bk, wv, bv, wf, bf = params
    q = x @ wq + bq
    k = x @ wk + bk
    v = x @ wv + bv
    scores = jnp.einsum("bqd,bkd->bqk", q, k) / math.sqrt(q.shape[-1])
    attn = jax.nn.softmax(scores, axis=-1)
    out = jnp.einsum("bqk,bkd->bqd", attn, v) @ wf + bf
    return out, attn


if __name__ == "__main__":
    B, S = 2, 8
    input_dim, d_k, d_v, d_model = 32, 32, 32, 32

    key = jax.random.PRNGKey(0)
    kx, kp = jax.random.split(key)
    x = jax.random.normal(kx, (B, S, input_dim), jnp.float32)
    params = init_params(kp, input_dim, d_k, d_v, d_model)

    out, attn = attention_network(x, params)   # bf16 MXU operands, f32 softmax/accum
    jax.block_until_ready((out, attn))

    ref_out, ref_attn = _reference(x, params)
    assert out.shape == (B, S, d_model) and attn.shape == (B, S, S)
    # bf16 MXU inputs => looser tolerances than the pure-f32 reference
    # (accumulation and softmax are f32).
    assert jnp.allclose(out, ref_out, atol=2e-2, rtol=2e-2)
    assert jnp.allclose(attn, ref_attn, atol=1e-2, rtol=1e-2)
    # Exact (non-approx) softmax divide => rows are proper probabilities.
    assert jnp.allclose(attn.sum(-1), 1.0, atol=1e-3)

    print("KERNEL_OK")
</pallas_src>

<mosaic_0001>
module attributes {stable_mosaic.version = 11 : i64} {
  func.func @_attention_kernel(%arg0: i32, %arg1: memref<8x32xf32, #tpu.memory_space<vmem>>, %arg2: memref<32x384xbf16, #tpu.memory_space<vmem>>, %arg3: memref<1x384xf32, #tpu.memory_space<vmem>>, %arg4: memref<128x128xbf16, #tpu.memory_space<vmem>>, %arg5: memref<1x128xf32, #tpu.memory_space<vmem>>, %arg6: memref<8x128xf32, #tpu.memory_space<vmem>>, %arg7: memref<1x8x8xf32, #tpu.memory_space<vmem>>) attributes {dimension_semantics = [#tpu.dimension_semantics<parallel>], iteration_bounds = array<i64: 2>, scalar_prefetch = 0 : i64, scratch_operands = 0 : i64, tpu.core_type = #tpu.core_type<tc>, window_params = [{transform_indices = @transform_0, window_bounds = array<i64: 8, 32>}, {pipeline_mode = #tpu.pipeline_mode<synchronous>, transform_indices = @transform_1, window_bounds = array<i64: 32, 384>}, {pipeline_mode = #tpu.pipeline_mode<synchronous>, transform_indices = @transform_2, window_bounds = array<i64: 1, 384>}, {pipeline_mode = #tpu.pipeline_mode<synchronous>, transform_indices = @transform_3, window_bounds = array<i64: 128, 128>}, {pipeline_mode = #tpu.pipeline_mode<synchronous>, transform_indices = @transform_4, window_bounds = array<i64: 1, 128>}, {transform_indices = @transform_5, window_bounds = array<i64: 8, 128>}, {transform_indices = @transform_6, window_bounds = array<i64: 1, 8, 8>}]} {
    %c0 = arith.constant 0 : index
    %c0_0 = arith.constant 0 : index
    %0 = vector.load %arg1[%c0, %c0_0] : memref<8x32xf32, #tpu.memory_space<vmem>>, vector<8x32xf32>
    %1 = arith.truncf %0 : vector<8x32xf32> to vector<8x32xbf16>
    %c0_1 = arith.constant 0 : index
    %c0_2 = arith.constant 0 : index
    %2 = vector.load %arg2[%c0_1, %c0_2] : memref<32x384xbf16, #tpu.memory_space<vmem>>, vector<32x384xbf16>
    %cst = arith.constant dense<0.000000e+00> : vector<8x384xf32>
    %3 = tpu.matmul %1, %2, %cst {dimension_numbers = #tpu.dot_dimension_numbers<[1], [0], [0], [1], [0, 0, 1, 1], [], []>} : vector<8x32xbf16>, vector<32x384xbf16>, vector<8x384xf32> -> vector<8x384xf32>
    %c0_3 = arith.constant 0 : index
    %c0_4 = arith.constant 0 : index
    %4 = vector.load %arg3[%c0_3, %c0_4] : memref<1x384xf32, #tpu.memory_space<vmem>>, vector<1x384xf32>
    %5 = vector.broadcast %4 : vector<1x384xf32> to vector<8x384xf32>
    %6 = arith.addf %3, %5 : vector<8x384xf32>
    %7 = vector.extract_strided_slice %6 {offsets = [0, 0], sizes = [8, 128], strides = [1, 1]} : vector<8x384xf32> to vector<8x128xf32>
    %8 = arith.truncf %7 : vector<8x128xf32> to vector<8x128xbf16>
    %9 = vector.shape_cast %8 : vector<8x128xbf16> to vector<1x8x128xbf16>
    %10 = vector.extract_strided_slice %6 {offsets = [0, 128], sizes = [8, 128], strides = [1, 1]} : vector<8x384xf32> to vector<8x128xf32>
    %11 = arith.truncf %10 : vector<8x128xf32> to vector<8x128xbf16>
    %12 = vector.shape_cast %11 : vector<8x128xbf16> to vector<1x8x128xbf16>
    %13 = vector.extract_strided_slice %6 {offsets = [0, 256], sizes = [8, 128], strides = [1, 1]} : vector<8x384xf32> to vector<8x128xf32>
    %14 = arith.truncf %13 : vector<8x128xf32> to vector<8x128xbf16>
    %15 = vector.shape_cast %14 : vector<8x128xbf16> to vector<1x8x128xbf16>
    %cst_5 = arith.constant dense<0.000000e+00> : vector<1x8x8xf32>
    %16 = tpu.matmul %9, %12, %cst_5 {dimension_numbers = #tpu.dot_dimension_numbers<[2], [2], [1], [1], [0, 0, 0, 1, 1, 1], [0], [0]>} : vector<1x8x128xbf16>, vector<1x8x128xbf16>, vector<1x8x8xf32> -> vector<1x8x8xf32>
    %cst_6 = arith.constant dense<0xFF800000> : vector<1x8xf32>
    %17 = vector.multi_reduction <maximumf>, %16, %cst_6 [2] : vector<1x8x8xf32> to vector<1x8xf32>
    %18 = vector.shape_cast %17 : vector<1x8xf32> to vector<1x8x1xf32>
    %19 = vector.broadcast %18 : vector<1x8x1xf32> to vector<1x8x8xf32>
    %20 = arith.subf %16, %19 : vector<1x8x8xf32>
    %21 = math.exp %20 : vector<1x8x8xf32>
    %cst_7 = arith.constant dense<0.000000e+00> : vector<1x8xf32>
    %22 = vector.multi_reduction <add>, %21, %cst_7 [2] : vector<1x8x8xf32> to vector<1x8xf32>
    %23 = vector.shape_cast %22 : vector<1x8xf32> to vector<1x8x1xf32>
    %cst_8 = arith.constant 1.000000e+00 : f32
    %24 = vector.broadcast %cst_8 : f32 to vector<1x8x1xf32>
    %25 = arith.divf %24, %23 : vector<1x8x1xf32>
    %26 = vector.broadcast %25 : vector<1x8x1xf32> to vector<1x8x8xf32>
    %27 = arith.mulf %21, %26 : vector<1x8x8xf32>
    %28 = arith.truncf %27 : vector<1x8x8xf32> to vector<1x8x8xbf16>
    %cst_9 = arith.constant dense<0.000000e+00> : vector<1x8x128xf32>
    %29 = tpu.matmul %28, %15, %cst_9 {dimension_numbers = #tpu.dot_dimension_numbers<[2], [1], [1], [2], [0, 0, 0, 1, 1, 2], [0], [0]>} : vector<1x8x8xbf16>, vector<1x8x128xbf16>, vector<1x8x128xf32> -> vector<1x8x128xf32>
    %30 = arith.truncf %29 : vector<1x8x128xf32> to vector<1x8x128xbf16>
    %31 = vector.shape_cast %30 : vector<1x8x128xbf16> to vector<8x128xbf16>
    %c0_10 = arith.constant 0 : index
    %c0_11 = arith.constant 0 : index
    %32 = vector.load %arg4[%c0_10, %c0_11] : memref<128x128xbf16, #tpu.memory_space<vmem>>, vector<128x128xbf16>
    %cst_12 = arith.constant dense<0.000000e+00> : vector<8x128xf32>
    %33 = tpu.matmul %31, %32, %cst_12 {dimension_numbers = #tpu.dot_dimension_numbers<[1], [0], [0], [1], [0, 0, 1, 1], [], []>} : vector<8x128xbf16>, vector<128x128xbf16>, vector<8x128xf32> -> vector<8x128xf32>
    %c0_13 = arith.constant 0 : index
    %c0_14 = arith.constant 0 : index
    %34 = vector.load %arg5[%c0_13, %c0_14] : memref<1x128xf32, #tpu.memory_space<vmem>>, vector<1x128xf32>
    %35 = vector.broadcast %34 : vector<1x128xf32> to vector<8x128xf32>
    %36 = arith.addf %33, %35 : vector<8x128xf32>
    %c0_15 = arith.constant 0 : index
    %c0_16 = arith.constant 0 : index
    %37 = vector.load %arg6[%c0_15, %c0_16] : memref<8x128xf32, #tpu.memory_space<vmem>>, vector<8x128xf32>
    tpu.vector_store %arg6[%c0_15, %c0_16], %36 {strides = array<i32>} : memref<8x128xf32, #tpu.memory_space<vmem>>, vector<8x128xf32>,
    %c0_17 = arith.constant 0 : index
    %c0_18 = arith.constant 0 : index
    %c0_19 = arith.constant 0 : index
    %38 = vector.load %arg7[%c0_17, %c0_18, %c0_19] : memref<1x8x8xf32, #tpu.memory_space<vmem>>, vector<1x8x8xf32>
    tpu.vector_store %arg7[%c0_17, %c0_18, %c0_19], %27 {strides = array<i32>} : memref<1x8x8xf32, #tpu.memory_space<vmem>>, vector<1x8x8xf32>,
    return
  }
  func.func @transform_0(%arg0: i32) -> (i32, i32) {
    %c0_i32 = arith.constant 0 : i32
    %c0_i32_0 = arith.constant 0 : i32
    return %arg0, %c0_i32 : i32, i32
  }
  func.func @transform_1(%arg0: i32) -> (i32, i32) {
    %c0_i32 = arith.constant 0 : i32
    %c0_i32_0 = arith.constant 0 : i32
    %c0_i32_1 = arith.constant 0 : i32
    return %c0_i32, %c0_i32_0 : i32, i32
  }
  func.func @transform_2(%arg0: i32) -> (i32, i32) {
    %c0_i32 = arith.constant 0 : i32
    %c0_i32_0 = arith.constant 0 : i32
    %c0_i32_1 = arith.constant 0 : i32
    return %c0_i32, %c0_i32_0 : i32, i32
  }
  func.func @transform_3(%arg0: i32) -> (i32, i32) {
    %c0_i32 = arith.constant 0 : i32
    %c0_i32_0 = arith.constant 0 : i32
    %c0_i32_1 = arith.constant 0 : i32
    return %c0_i32, %c0_i32_0 : i32, i32
  }
  func.func @transform_4(%arg0: i32) -> (i32, i32) {
    %c0_i32 = arith.constant 0 : i32
    %c0_i32_0 = arith.constant 0 : i32
    %c0_i32_1 = arith.constant 0 : i32
    return %c0_i32, %c0_i32_0 : i32, i32
  }
  func.func @transform_5(%arg0: i32) -> (i32, i32) {
    %c0_i32 = arith.constant 0 : i32
    %c0_i32_0 = arith.constant 0 : i32
    return %arg0, %c0_i32 : i32, i32
  }
  func.func @transform_6(%arg0: i32) -> (i32, i32, i32) {
    %c0_i32 = arith.constant 0 : i32
    %c0_i32_0 = arith.constant 0 : i32
    %c0_i32_1 = arith.constant 0 : i32
    return %arg0, %c0_i32, %c0_i32_0 : i32, i32, i32
  }
}

module attributes {stable_mosaic.version = 11 : i64} {
  func.func @_attention_kernel(%arg0: i32, %arg1: memref<8x32xf32, #tpu.memory_space<vmem>>, %arg2: memref<32x384xbf16, #tpu.memory_space<vmem>>, %arg3: memref<1x384xf32, #tpu.memory_space<vmem>>, %arg4: memref<128x128xbf16, #tpu.memory_space<vmem>>, %arg5: memref<1x128xf32, #tpu.memory_space<vmem>>, %arg6: memref<8x128xf32, #tpu.memory_space<vmem>>, %arg7: memref<1x8x8xf32, #tpu.memory_space<vmem>>) attributes {dimension_semantics = [#tpu.dimension_semantics<parallel>], iteration_bounds = array<i64: 2>, scalar_prefetch = 0 : i64, scratch_operands = 0 : i64, tpu.core_type = #tpu.core_type<tc>, window_params = [{transform_indices = @transform_0, window_bounds = array<i64: 8, 32>}, {pipeline_mode = #tpu.pipeline_mode<synchronous>, transform_indices = @transform_1, window_bounds = array<i64: 32, 384>}, {pipeline_mode = #tpu.pipeline_mode<synchronous>, transform_indices = @transform_2, window_bounds = array<i64: 1, 384>}, {pipeline_mode = #tpu.pipeline_mode<synchronous>, transform_indices = @transform_3, window_bounds = array<i64: 128, 128>}, {pipeline_mode = #tpu.pipeline_mode<synchronous>, transform_indices = @transform_4, window_bounds = array<i64: 1, 128>}, {transform_indices = @transform_5, window_bounds = array<i64: 8, 128>}, {transform_indices = @transform_6, window_bounds = array<i64: 1, 8, 8>}]} {
    %c0 = arith.constant 0 : index
    %c0_0 = arith.constant 0 : index
    %0 = vector.load %arg1[%c0, %c0_0] : memref<8x32xf32, #tpu.memory_space<vmem>>, vector<8x32xf32>
    %1 = arith.truncf %0 : vector<8x32xf32> to vector<8x32xbf16>
    %c0_1 = arith.constant 0 : index
    %c0_2 = arith.constant 0 : index
    %2 = vector.load %arg2[%c0_1, %c0_2] : memref<32x384xbf16, #tpu.memory_space<vmem>>, vector<32x384xbf16>
    %cst = arith.constant dense<0.000000e+00> : vector<8x384xf32>
    %3 = tpu.matmul %1, %2, %cst {dimension_numbers = #tpu.dot_dimension_numbers<[1], [0], [0], [1], [0, 0, 1, 1], [], []>} : vector<8x32xbf16>, vector<32x384xbf16>, vector<8x384xf32> -> vector<8x384xf32>
    %c0_3 = arith.constant 0 : index
    %c0_4 = arith.constant 0 : index
    %4 = vector.load %arg3[%c0_3, %c0_4] : memref<1x384xf32, #tpu.memory_space<vmem>>, vector<1x384xf32>
    %5 = vector.broadcast %4 : vector<1x384xf32> to vector<8x384xf32>
    %6 = arith.addf %3, %5 : vector<8x384xf32>
    %7 = vector.extract_strided_slice %6 {offsets = [0, 0], sizes = [8, 128], strides = [1, 1]} : vector<8x384xf32> to vector<8x128xf32>
    %8 = arith.truncf %7 : vector<8x128xf32> to vector<8x128xbf16>
    %9 = vector.shape_cast %8 : vector<8x128xbf16> to vector<1x8x128xbf16>
    %10 = vector.extract_strided_slice %6 {offsets = [0, 128], sizes = [8, 128], strides = [1, 1]} : vector<8x384xf32> to vector<8x128xf32>
    %11 = arith.truncf %10 : vector<8x128xf32> to vector<8x128xbf16>
    %12 = vector.shape_cast %11 : vector<8x128xbf16> to vector<1x8x128xbf16>
    %13 = vector.extract_strided_slice %6 {offsets = [0, 256], sizes = [8, 128], strides = [1, 1]} : vector<8x384xf32> to vector<8x128xf32>
    %14 = arith.truncf %13 : vector<8x128xf32> to vector<8x128xbf16>
    %15 = vector.shape_cast %14 : vector<8x128xbf16> to vector<1x8x128xbf16>
    %cst_5 = arith.constant dense<0.000000e+00> : vector<1x8x8xf32>
    %16 = tpu.matmul %9, %12, %cst_5 {dimension_numbers = #tpu.dot_dimension_numbers<[2], [2], [1], [1], [0, 0, 0, 1, 1, 1], [0], [0]>} : vector<1x8x128xbf16>, vector<1x8x128xbf16>, vector<1x8x8xf32> -> vector<1x8x8xf32>
    %cst_6 = arith.constant dense<0xFF800000> : vector<1x8xf32>
    %17 = vector.multi_reduction <maximumf>, %16, %cst_6 [2] : vector<1x8x8xf32> to vector<1x8xf32>
    %18 = vector.shape_cast %17 : vector<1x8xf32> to vector<1x8x1xf32>
    %19 = vector.broadcast %18 : vector<1x8x1xf32> to vector<1x8x8xf32>
    %20 = arith.subf %16, %19 : vector<1x8x8xf32>
    %21 = math.exp %20 : vector<1x8x8xf32>
    %cst_7 = arith.constant dense<0.000000e+00> : vector<1x8xf32>
    %22 = vector.multi_reduction <add>, %21, %cst_7 [2] : vector<1x8x8xf32> to vector<1x8xf32>
    %23 = vector.shape_cast %22 : vector<1x8xf32> to vector<1x8x1xf32>
    %cst_8 = arith.constant 1.000000e+00 : f32
    %24 = vector.broadcast %cst_8 : f32 to vector<1x8x1xf32>
    %25 = arith.divf %24, %23 : vector<1x8x1xf32>
    %26 = vector.broadcast %25 : vector<1x8x1xf32> to vector<1x8x8xf32>
    %27 = arith.mulf %21, %26 : vector<1x8x8xf32>
    %28 = arith.truncf %27 : vector<1x8x8xf32> to vector<1x8x8xbf16>
    %cst_9 = arith.constant dense<0.000000e+00> : vector<1x8x128xf32>
    %29 = tpu.matmul %28, %15, %cst_9 {dimension_numbers = #tpu.dot_dimension_numbers<[2], [1], [1], [2], [0, 0, 0, 1, 1, 2], [0], [0]>} : vector<1x8x8xbf16>, vector<1x8x128xbf16>, vector<1x8x128xf32> -> vector<1x8x128xf32>
    %30 = arith.truncf %29 : vector<1x8x128xf32> to vector<1x8x128xbf16>
    %31 = vector.shape_cast %30 : vector<1x8x128xbf16> to vector<8x128xbf16>
    %c0_10 = arith.constant 0 : index
    %c0_11 = arith.constant 0 : index
    %32 = vector.load %arg4[%c0_10, %c0_11] : memref<128x128xbf16, #tpu.memory_space<vmem>>, vector<128x128xbf16>
    %cst_12 = arith.constant dense<0.000000e+00> : vector<8x128xf32>
    %33 = tpu.matmul %31, %32, %cst_12 {dimension_numbers = #tpu.dot_dimension_numbers<[1], [0], [0], [1], [0, 0, 1, 1], [], []>} : vector<8x128xbf16>, vector<128x128xbf16>, vector<8x128xf32> -> vector<8x128xf32>
    %c0_13 = arith.constant 0 : index
    %c0_14 = arith.constant 0 : index
    %34 = vector.load %arg5[%c0_13, %c0_14] : memref<1x128xf32, #tpu.memory_space<vmem>>, vector<1x128xf32>
    %35 = vector.broadcast %34 : vector<1x128xf32> to vector<8x128xf32>
    %36 = arith.addf %33, %35 : vector<8x128xf32>
    %c0_15 = arith.constant 0 : index
    %c0_16 = arith.constant 0 : index
    %37 = vector.load %arg6[%c0_15, %c0_16] : memref<8x128xf32, #tpu.memory_space<vmem>>, vector<8x128xf32>
    tpu.vector_store %arg6[%c0_15, %c0_16], %36 {strides = array<i32>} : memref<8x128xf32, #tpu.memory_space<vmem>>, vector<8x128xf32>,
    %c0_17 = arith.constant 0 : index
    %c0_18 = arith.constant 0 : index
    %c0_19 = arith.constant 0 : index
    %38 = vector.load %arg7[%c0_17, %c0_18, %c0_19] : memref<1x8x8xf32, #tpu.memory_space<vmem>>, vector<1x8x8xf32>
    tpu.vector_store %arg7[%c0_17, %c0_18, %c0_19], %27 {strides = array<i32>} : memref<1x8x8xf32, #tpu.memory_space<vmem>>, vector<1x8x8xf32>,
    return
  }
  func.func @transform_0(%arg0: i32) -> (i32, i32) {
    %c0_i32 = arith.constant 0 : i32
    %c0_i32_0 = arith.constant 0 : i32
    return %arg0, %c0_i32 : i32, i32
  }
  func.func @transform_1(%arg0: i32) -> (i32, i32) {
    %c0_i32 = arith.constant 0 : i32
    %c0_i32_0 = arith.constant 0 : i32
    %c0_i32_1 = arith.constant 0 : i32
    return %c0_i32, %c0_i32_0 : i32, i32
  }
  func.func @transform_2(%arg0: i32) -> (i32, i32) {
    %c0_i32 = arith.constant 0 : i32
    %c0_i32_0 = arith.constant 0 : i32
    %c0_i32_1 = arith.constant 0 : i32
    return %c0_i32, %c0_i32_0 : i32, i32
  }
  func.func @transform_3(%arg0: i32) -> (i32, i32) {
    %c0_i32 = arith.constant 0 : i32
    %c0_i32_0 = arith.constant 0 : i32
    %c0_i32_1 = arith.constant 0 : i32
    return %c0_i32, %c0_i32_0 : i32, i32
  }
  func.func @transform_4(%arg0: i32) -> (i32, i32) {
    %c0_i32 = arith.constant 0 : i32
    %c0_i32_0 = arith.constant 0 : i32
    %c0_i32_1 = arith.constant 0 : i32
    return %c0_i32, %c0_i32_0 : i32, i32
  }
  func.func @transform_5(%arg0: i32) -> (i32, i32) {
    %c0_i32 = arith.constant 0 : i32
    %c0_i32_0 = arith.constant 0 : i32
    return %arg0, %c0_i32 : i32, i32
  }
  func.func @transform_6(%arg0: i32) -> (i32, i32, i32) {
    %c0_i32 = arith.constant 0 : i32
    %c0_i32_0 = arith.constant 0 : i32
    %c0_i32_1 = arith.constant 0 : i32
    return %arg0, %c0_i32, %c0_i32_0 : i32, i32, i32
  }
}

</mosaic_0001>

<bundles_post_ra>
// kernel: tpu_custom_call.1
= control target key start
LH: loop header
LB: loop body
LE: loop exit
PB: predicated region body
PF: predicated region fallthrough
CT: control target
= control target key end

     0   :  { %s1474_s0 = inlined_call_operand.hbm [shape: f32[16,32], index: 0, kind: input, shape index: {}]   ;;  %s1475_s1 = inlined_call_operand.hbm [shape: bf16[32,384], index: 1, kind: input, shape index: {}]   ;;  %s1476_s2 = inlined_call_operand.vmem [shape: f32[1,384], index: 2, kind: input, shape index: {}]   ;;  %s1477_s3 = inlined_call_operand.hbm [shape: bf16[128,128], index: 3, kind: input, shape index: {}]   ;;  %s1478_s4 = inlined_call_operand.vmem [shape: f32[1,128], index: 4, kind: input, shape index: {}]   ;;  %s1479_s5 = inlined_call_operand.hbm [shape: f32[16,128], index: 5, kind: output, shape index: {0}]   ;;  %s1480_s6 = inlined_call_operand.hbm [shape: f32[2,8,8], index: 6, kind: output, shape index: {1}]  }
   0x1   :  { %1485 = sst [smem:[#allocation15_spill]] %s1475_s1 }
   0x2   :  { %12 = vsyncpa [#allocation3], 0 }
   0x3   :  { %14 = vsyncpa [#allocation3 + $0x1], 0 }
   0x4   :  { %15 = vsyncpa [#allocation6], 0 }
   0x5   :  { %16 = vsyncpa [#allocation4], 0 }
   0x6   :  { %18 = vsyncpa [#allocation4 + $0x1], 0 }
   0x7   :  { %19 = vsyncpa [#allocation10], 0 }
   0x8   :  { %21 = vsyncpa [#allocation10 + $0x1], 0  ;;  %s1242_s21 = smov 0   ;;  %s1244_s22 = smov 0  }
   0x9   :  { %s1246_s23 = smov 0   ;;  %s1248_s24 = smov 0  }
   0xa LB: > { %s1263_s25 = sadd.s32 4294967295, %s1193_s24   ;;  %s823_s26 = sadd.s32 4294967294, %s1193_s24   ;;  %s1193_s24 = sphi %s1248_s24, %s1504_s24   ;;  %s1189_s23 = sphi %s1246_s23, %s1503_s23   ;;  %s1185_s22 = sphi %s1244_s22, %s1502_s22   ;;  %s1181_s21 = sphi %s1242_s21, %s1501_s21  }
   0xb   : > { %p47_p0 = scmp.ne.s32.totalorder %s1185_s22, %s1181_s21  ;;  %p1481_p1 = scmp.eq.s32.totalorder %s1263_s25, 0 }
   0xc   : > { %p161_p3 = scmp.eq.s32.totalorder %s823_s26, 1  ;;  %p824_p5 = scmp.ge.s32.totalorder %s1193_s24, 1 }
   0xd   : > { %p1272_p4 = por %p1481_p1, %p47_p0  ;;  %p194_p7 = scmp.lt.s32.totalorder %s1193_s24, 3 }
   0xe   : > { %p1277_p6 = por %p161_p3, %p47_p0  ;;  %s1195_s30 = smov [#allocation5]  }
   0xf   : > { %s1486_s27 = scalar_select %p1272_p4, 1, 0 }
  0x10   : > { %s1487_s28 = scalar_select %p1277_p6, 1, 0 }
  0x11   : > { %p1282_p8 = pnand %p824_p5, %p194_p7  ;;  %s206_s7 = sshll.u32 %s1195_s30, 4  ;;  %s207_s7 = int_to_ptr.vmem [resolvable:$true] %s206_s7 }
  0x12   : > { %s1196_s9 = smov [#allocation7]   ;;  %s1026_s11 = scalar_lea.vmem %s207_s7, 768 }
  0x13   : > { %s1488_s29 = scalar_select %p1282_p8, 1, 0 }
  0x14   : > { %p930_p9 = pneg %p1282_p8  ;;  %s222_s10 = sshll.u32 %s1196_s9, 4  ;;  %s223_s10 = int_to_ptr.vmem [resolvable:$true] %s222_s10 }
  0x15   : > { %p1027_p13 = scmp.ne.s32.totalorder %s207_s7, %s1026_s11  ;;  %p1034_p5 = scmp.lt.s32.totalorder %s207_s7, %s207_s7 }
  0x16   : > { %p1291_p11 = pnand %p930_p9, %p1481_p1  ;;  %p1035_p7 = scmp.lt.s32.totalorder %s1026_s11, %s1026_s11 }
  0x18   : > { %p1017_p12 = pneg %p1291_p11  ;;  %p1036_p10 = por %p1035_p7, %p1034_p5 }
  0x1a   : > { %p1029_p0 = pnand %p1027_p13, %p1017_p12 }
  0x1c   : > { %p1030_p3 = pneg %p1029_p0 }
  0x1e   : > { %p1037_p9 = pnand %p1036_p10, %p1030_p3 }
  0x20   : > { %1040 = shalt.err (!%p1037_p9)
}
  0x21   : > { %s1197_s12 = smov 192   ;;  %s1198_s13 = smov 12  }
  0x22   : > { %s1490_s1 = sld [smem:[#allocation15_spill]]  ;;  %s1052_s16 = scalar_lea.vmem %s223_s10, 1024 }
  0x23   : > { %p1053_p1 = scmp.ne.s32.totalorder %s223_s10, %s1052_s16  ;;  %p1060_p2 = scmp.lt.s32.totalorder %s223_s10, %s223_s10 }
  0x24   : > { %p1061_p6 = scmp.lt.s32.totalorder %s1052_s16, %s1052_s16 }
  0x25   : > { %p1055_p13 = pnand %p1053_p1, %p1017_p12 }
  0x26   : > { %p1062_p5 = por %p1061_p6, %p1060_p2 }
  0x27   : > { %p1056_p0 = pneg %p1055_p13 }
  0x28   : > { %933 = dma.hbm_to_vmem [thread:$0]  (!%p1291_p11), %s1490_s1, 768, %s207_s7, [#allocation6], %s1197_s12, %s1197_s12, %s1198_s13  }
  0x29   : > { %p1063_p10 = pnand %p1062_p5, %p1056_p0 }
  0x2b   : > { %1066 = shalt.err (!%p1063_p10)
}
  0x2c   : > { %s1199_s17 = smov 64   ;;  %s1200_s18 = smov 4  }
  0x2d   : > { %936 = dma.hbm_to_vmem [thread:$0]  (!%p1291_p11), %s1477_s3, 1024, %s223_s10, [#allocation6], %s1199_s17, %s1199_s17, %s1200_s18  }
  0x2e   : > { %s1314_s26 = sadd.s32 1, %s1193_s24   ;;  %s34_s7 = sadd.s32 1, %s1189_s23 }
  0x2f   : > { %s31_s30 = ssub.s32 %s1193_s24, %s1314_s26  ;;  %p41_p2 = scmp.ne.s32.totalorder %s1189_s23, %s1185_s22 }
  0x30   : > { %p32_p1 = scmp.eq.s32.totalorder %s31_s30, 0  ;;  %p42_p6 = scmp.eq.s32.totalorder %s1193_s24, 0 }
  0x31   : > { %p1491_p3 = scmp.eq.s32.totalorder %s1263_s25, 1  ;;  %p950_p9 = scmp.lt.s32.totalorder %s1193_s24, 2 }
  0x32   : > { %s1323_s9 = scalar_select %p32_p1, %s1189_s23, %s34_s7  }
  0x33   : > { %p43_p12 = por %p42_p6, %p41_p2  ;;  %p1327_p7 = por %p1491_p3, %p41_p2 }
  0x34   : > { %s239_s8 = sand.u32 1, %s1189_s23   ;;  %s829_s10 = sshll.u32 %s1193_s24, 7 }
  0x35   : > { %s1492_s11 = scalar_select %p1327_p7, 1, 0 }
  0x36   : > { %s828_s12 = sshll.u32 %s239_s8, 3  ;;  %s1337_s15 = scalar_lea.hbm %s1474_s0, %s829_s10 }
  0x37   : > { %s243_s16 = scalar_lea.vmem [#allocation2], %s828_s12  ;;  %p1339_p11 = pnand %p950_p9, %p43_p12 }
  0x38   : > { %s250_s17 = sshll.u32 %s243_s16, 4  ;;  %s240_s19 = scalar_lea.sflag [#allocation3], %s239_s8  ;;  %s251_s17 = int_to_ptr.vmem [resolvable:$true] %s250_s17 }
  0x39   : > { %s1067_s20 = scalar_lea.hbm %s1337_s15, 128  ;;  %p1069_p0 = pneg %p1339_p11 }
  0x3a   : > { %p1068_p13 = scmp.ne.s32.totalorder %s1337_s15, %s1067_s20  ;;  %s1072_s10 = scalar_lea.hbm %s1474_s0, 256 }
  0x3b   : > { %p1073_p1 = scmp.lt.s32.totalorder %s1337_s15, %s1474_s0  ;;  %p1074_p2 = scmp.lt.s32.totalorder %s1072_s10, %s1067_s20 }
  0x3c   : > { %p1070_p5 = pnand %p1069_p0, %p1068_p13 }
  0x3d   : > { %p1075_p6 = por %p1074_p2, %p1073_p1 }
  0x3e   : > { %p1071_p10 = pneg %p1070_p5 }
  0x40   : > { %p1076_p12 = pnand %p1075_p6, %p1071_p10 }
  0x42   : > { %1079 = shalt.err (!%p1076_p12)
}
  0x43   : > { %s1080_s14 = scalar_lea.vmem %s251_s17, 128  ;;  %s1201_s8 = smov [#allocation2]  }
  0x44   : > { %p1081_p3 = scmp.ne.s32.totalorder %s251_s17, %s1080_s14  ;;  %s1085_s16 = sshll.u32 %s1201_s8, 4  ;;  %s1086_s16 = int_to_ptr.vmem [resolvable:$false] %s1085_s16 }
  0x45   : > { %s1087_s1 = scalar_lea.vmem %s1086_s16, 256  ;;  %p1088_p13 = scmp.lt.s32.totalorder %s251_s17, %s1086_s16 }
  0x46   : > { %p1083_p9 = pnand %p1081_p3, %p1069_p0  ;;  %p1089_p5 = scmp.lt.s32.totalorder %s1087_s1, %s1080_s14 }
  0x48   : > { %p1084_p7 = pneg %p1083_p9  ;;  %p1090_p4 = por %p1089_p5, %p1088_p13 }
  0x4a   : > { %p1091_p8 = pnand %p1090_p4, %p1084_p7 }
  0x4c   : > { %1094 = shalt.err (!%p1091_p8)
}
  0x4d   : > { %940 = dma.hbm_to_vmem [thread:$0]  (!%p1339_p11), %s1337_s15, 128, %s251_s17, %s240_s19  }
  0x4e   : > { %p1494_p10 = scmp.ne.s32.totalorder %s1488_s29, 0 }
  0x4f   : > { %s1360_s20 = sand.u32 (!%p1494_p10), 1, %s1185_s22   ;;  %p1495_p4 = scmp.ne.s32.totalorder (!%p1494_p10), %s1486_s27, 0 }
  0x50   : > { %259 = sbr.rel (%p1494_p10) target bundleno = 1216 (0x4c0), region = 40  ;;  %s1363_s30 = sshll.u32 (!%p1494_p10), %s1360_s20, 3 }
  0x51   : > { %s262_s1 = scalar_lea.sflag (!%p1494_p10), [#allocation3], %s1360_s20  ;;  %s265_s7 = scalar_lea.vmem (!%p1494_p10), [#allocation2], %s1363_s30 }
  0x55   : > { %1164 = dma.done.wait (%p1495_p4), %s262_s1, 128  }
  0x56   : > { %1166 = vsyncadd (%p1495_p4), %s262_s1, 4294967168  ;;  %p1496_p8 = scmp.eq.s32.totalorder %s1263_s25, 0 }
  0x58   : > { %1168 = dma.done.wait (%p1496_p8), [#allocation6], 1792   ;;  %p1497_p7 = pmov %p1496_p8 }
  0x59   : > { %v1202_v0 = vmov 0   ;;  %v1203_v1 = vmov 0.0   ;;  %v995_v2 = vld [vmem:[#allocation5 + $0x1c] ss:$12 sps:$4 sm:$0xff]   ;;  %v997_v3 = vld [vmem:[#allocation5 + $0x18] ss:$12 sps:$4 sm:$0xff]   ;;  %v320_v10 = vlaneseq }
  0x5a   : > { %1170 = vsyncadd (%p1497_p7), [#allocation6], 4294965504  ;;  %403 = vmatprep.mubr.bf16.mxu1 %v1202_v0  ;;  %896 = vmatprep.subr.bf16.mxu0 %v1203_v1  ;;  %v998_v4 = vld [vmem:[#allocation5 + $0x4] ss:$12 sps:$4 sm:$0xff]   ;;  %v1000_v5 = vld [vmem:[#allocation5] ss:$12 sps:$4 sm:$0xff]  }
  0x5b   : > { %383 = vmatprep.subr.bf16.mxu1 %v995_v2  ;;  %v308_v6 = vld [vmem:[%s265_s7] sm:$0xff]  ;;  %vm367_vm0 = vcmask 261120   ;;  %v1001_v7 = vld [vmem:[#allocation5 + $0x20] ss:$12 sps:$4 sm:$0xff]   ;;  %vm1204_vm1 = vmmov 0   ;;  %v321_v11 = vshrl.u32 %v320_v10, 7 }
  0x5c   : > { %384 = vmatpush1.bf16.msra.mxu1 %v997_v3  ;;  %v309_v8 = vpack.c.bf16 %v308_v6, %v308_v6  ;;  %v1002_v9 = vld [vmem:[#allocation5 + $0x8] ss:$12 sps:$4 sm:$0xff]   ;;  %912 = vmatprep.mubr.msk.bf16.mxu0 %vm1204_vm1, %v1203_v1  ;;  %v318_v13 = vld [vmem:[%s1476_s2] sm:$0x7]  ;;  %vm512_vm2 = vcmask 1043456   ;;  %vm495_vm3 = vcmask 64512  }
  0x5d   : > { %385 = vmatprep.subr.bf16.mxu1 %v998_v4  ;;  %v326_v12 = vsub.s32 1, %v321_v11  ;;  %v322_v15 = vsub.s32 0, %v321_v11  ;;  %v330_v25 = vsub.s32 2, %v321_v11  ;;  %v1003_v44 = vld [vmem:[#allocation7 + $0x38] sm:$0xff]   ;;  %v1004_v45 = vld [vmem:[#allocation7 + $0x30] sm:$0xff]   ;;  %v1005_v46 = vld [vmem:[#allocation7 + $0x28] sm:$0xff]  }
  0x5e   : > { %897 = vmatpush3.bf16.msra.mxu0 %v1003_v44  ;;  %v1006_v47 = vld [vmem:[#allocation7 + $0x20] sm:$0xff]   ;;  %v1007_v48 = vld [vmem:[#allocation7 + $0x18] sm:$0xff]   ;;  %v1008_v49 = vld [vmem:[#allocation7 + $0x10] sm:$0xff]   ;;  %s306_s15 = scalar_lea.vmem [#allocation9], %s1363_s30  ;;  %s856_s17 = sshll.u32 %s1263_s25, 7 }
  0x5f   : > { %v327_v14 = vrot.slane %v318_v13, %v326_v12  ;;  %v323_v19 = vrot.slane %v318_v13, %v322_v15  ;;  %v331_v26 = vrot.slane %v318_v13, %v330_v25  ;;  %898 = vmatprep.subr.bf16.mxu0 %v1203_v1  ;;  %v1009_v50 = vld [vmem:[#allocation7 + $0x8] sm:$0xff]   ;;  %v1010_v55 = vld [vmem:[#allocation7] sm:$0xff]   ;;  %s700_s10 = scalar_lea.hbm %s1480_s6, %s856_s17  ;;  %s702_s13 = sshll.u32 %s306_s15, 4  ;;  %s703_s13 = int_to_ptr.vmem [resolvable:$true] %s702_s13 }
  0x60   : > { %386 = vmatpush1.bf16.msra.mxu1 %v1000_v5  ;;  %s676_s12 = scalar_lea.sflag [#allocation10], %s1360_s20  ;;  %s1095_s14 = scalar_lea.vmem %s703_s13, 128 }
  0x61   : > { %876 = vmatprep.subr.bf16.mxu1 %v1203_v1  ;;  %p1096_p11 = scmp.ne.s32.totalorder %s703_s13, %s1095_s14  ;;  %p1498_p0 = scmp.ne.s32.totalorder %s1492_s11, 0 }
  0x62   : > { %899 = vmatpush3.bf16.msra.mxu0 %v1004_v45  ;;  %s1205_s8 = smov [#allocation9]  }
  0x63   : > { %842 = vmatmul.mubr.msk.bf16.vlgmr.msra.gmra.mxu1 %vm367_vm0, %v309_v8  ;;  %900 = vmatprep.subr.bf16.mxu0 %v1203_v1  ;;  %p1097_p1 = pnand %p1096_p11, %p1498_p0  ;;  %s1099_s16 = sshll.u32 %s1205_s8, 4  ;;  %s1100_s16 = int_to_ptr.vmem [resolvable:$false] %s1099_s16 }
  0x64   : > { %877 = vmatpush3.bf16.msra.mxu1 %v1001_v7  ;;  %880 = vmatprep.mubr.msk.bf16.mxu1 %vm1204_vm1, %v1203_v1  ;;  %s1101_s1 = scalar_lea.vmem %s1100_s16, 256  ;;  %p1102_p6 = scmp.lt.s32.totalorder %s703_s13, %s1100_s16 }
  0x65   : > { %878 = vmatprep.subr.bf16.mxu1 %v1203_v1  ;;  %p1098_p2 = pneg %p1097_p1  ;;  %p1103_p12 = scmp.lt.s32.totalorder %s1101_s1, %s1095_s14 }
  0x66   : > { %901 = vmatpush3.bf16.msra.mxu0 %v1005_v46 }
  0x67   : > { %902 = vmatprep.subr.bf16.mxu0 %v1203_v1  ;;  %p1104_p3 = por %p1103_p12, %p1102_p6 }
  0x68   : > { %879 = vmatpush3.bf16.msra.mxu1 %v1002_v9 }
  0x69   : > { %884 = vmatprep.subr.bf16.mxu1 %v1203_v1  ;;  %p1105_p9 = pnand %p1104_p3, %p1098_p2 }
  0x6a   : > { %903 = vmatpush3.bf16.msra.mxu0 %v1006_v47 }
  0x6b   : > { %881 = vmatmul.mubr.msk.bf16.vlgmr.msra.gmra.mxu1 %vm367_vm0, %v309_v8  ;;  %904 = vmatprep.subr.bf16.mxu0 %v1203_v1 }
  0x6c   : > { %886 = vmatprep.mubr.msk.bf16.mxu1 %vm1204_vm1, %v1203_v1 }
  0x6e   : > { %905 = vmatpush3.bf16.msra.mxu0 %v1007_v48 }
  0x6f   : > { %906 = vmatprep.subr.bf16.mxu0 %v1203_v1 }
  0x72   : > { %907 = vmatpush3.bf16.msra.mxu0 %v1008_v49 }
  0x73   : > { %908 = vmatprep.subr.bf16.mxu0 %v1203_v1 }
  0x76   : > { %909 = vmatpush3.bf16.msra.mxu0 %v1009_v50 }
  0x77   : > { %910 = vmatprep.subr.bf16.mxu0 %v1203_v1 }
  0x7a   : > { %911 = vmatpush3.bf16.msra.mxu0 %v1010_v55 }
 0x123   : > { %v405_v16 = vpop.f32.mrf.mxu1 }
 0x124   : > { %v406_v23 = vadd.f32 %v405_v16, %v323_v19 }
 0x125   : > { %v407_v17 = vpop.f32.mrf.mxu1 }
 0x126   : > { %v408_v18 = vadd.f32 %v407_v17, %v327_v14  ;;  %v452_v24 = vpack.c.bf16 %v406_v23, %v406_v23 }
 0x127   : > { %v409_v20 = vpop.f32.mrf.mxu1 }
 0x128   : > { %v453_v21 = vpack.c.bf16 %v408_v18, %v408_v18 }
 0x129   : > { %v410_v22 = vpop.f32.mrf.mxu1 }
 0x12a   : > { %885 = vmatpush3.bf16.xpose.msra.mxu1 %v453_v21 }
 0x12b   : > { %890 = vmatprep.subr.bf16.mxu1 %v1203_v1  ;;  %v446_v27 = vpop.f32.mrf.mxu1 }
 0x12c   : > { %v447_v28 = vadd.f32 %v446_v27, %v331_v26 }
 0x12d   : > { %v882_v29 = vpop.f32.mrf.mxu1 }
 0x12e   : > { %v454_v30 = vpack.c.bf16 %v447_v28, %v447_v28 }
 0x12f   : > { %v449_v31 = vpop.f32.mrf.mxu1 }
 0x130   : > { %v514_v32 = vsel %vm512_vm2, %v454_v30, 0 }
 0x131   : > { %887 = vmatmul.mubr.bf16.vlgmr.msra.gmra.mxu1 %v452_v24  ;;  %v883_v33 = vpop.f32.mrf.mxu1 }
 0x132   : > { %892 = vmatprep.mubr.msk.bf16.mxu1 %vm1204_vm1, %v1203_v1  ;;  %891 = vmatpush3.bf16.msra.mxu1 %v514_v32 }
 0x1f1   : > { %v489_v34 = vpop.f32.mrf.mxu1 }
 0x1f2   : > { %v496_v35 = vsel %vm495_vm3, %v489_v34, -inf }
 0x1f3   : > { %497 = vmax.xlane.f32.xlu0 %v496_v35  ;;  %v888_v36 = vpop.f32.mrf.mxu1 }
 0x1f5   : > { %v492_v37 = vpop.f32.mrf.mxu1 }
 0x1f7   : > { %v889_v38 = vpop.f32.mrf.mxu1 }
 0x27c   : > { %v498_v39 = vpop.xlane.xlu0 %497 }
 0x27d   : > { %v499_v40 = vsub.f32 %v489_v34, %v498_v39 }
 0x27f   : > { %v500_v41 = vmul.f32 1.442695, %v499_v40 }
 0x281   : > { %1011 = vpow2.f32 %v500_v41 }
 0x28e   : > { %v1012_v42 = vpop.eup %1011 }
 0x28f   : > { %v502_v43 = vsel %vm495_vm3, %v1012_v42, 0.0 }
 0x290   : > { %503 = vadd.xlane.f32.xlu0 %v502_v43 }
 0x319   : > { %v504_v51 = vpop.xlane.xlu0 %503 }
 0x31a   : > { %1013 = vrcp.f32 %v504_v51 }
 0x327   : > { %v1014_v52 = vpop.eup %1013 }
 0x328   : > { %v507_v53 = vmul.f32 %v1014_v52, %v1012_v42 }
 0x32a   : > { %v508_v54 = vpack.c.bf16 %v507_v53, %v507_v53  ;;  %669 = vst.msk [vmem:[%s306_s15] sm:$0xff] %vm495_vm3, %v507_v53 }
 0x32c   : > { %893 = vmatmul.mubr.msk.bf16.vlgmr.msra.gmra.mxu1 %vm495_vm3, %v508_v54 }
 0x3ec   : > { %v550_v56 = vpop.f32.mrf.mxu1 }
 0x3ed   : > { %v556_v57 = vpack.c.bf16 %v550_v56, %v550_v56 }
 0x3ee   : > { %v894_v58 = vpop.f32.mrf.mxu1 }
 0x3ef   : > { %913 = vmatmul.mubr.bf16.vlgmr.msra.gmra.mxu0 %v556_v57 }
 0x3f0   : > { %v553_v59 = vpop.f32.mrf.mxu1 }
 0x3f2   : > { %v895_v60 = vpop.f32.mrf.mxu1 }
 0x3f3   : > { %1108 = shalt.err (!%p1105_p9)
}
 0x3f4   : > { %s1109_s7 = scalar_lea.hbm %s700_s10, 128  ;;  %s1113_s15 = scalar_lea.hbm %s1480_s6, 256 }
 0x3f5   : > { %p1110_p13 = scmp.ne.s32.totalorder %s700_s10, %s1109_s7  ;;  %p1114_p4 = scmp.lt.s32.totalorder %s700_s10, %s1480_s6 }
 0x3f6   : > { %p1115_p8 = scmp.lt.s32.totalorder %s1113_s15, %s1109_s7 }
 0x3f7   : > { %p1111_p5 = pnand %p1110_p13, %p1498_p0 }
 0x3f8   : > { %p1116_p7 = por %p1115_p8, %p1114_p4 }
 0x3f9   : > { %p1112_p10 = pneg %p1111_p5 }
 0x3fb   : > { %p1117_p11 = pnand %p1116_p7, %p1112_p10 }
 0x3fd   : > { %1120 = shalt.err (!%p1117_p11)
}
 0x3fe   : > { %927 = dma.vmem_to_hbm [thread:$0]  (%p1498_p0), %s703_s13, 128, %s700_s10, %s676_s12   ;;  %v845_v61 = vld [vmem:[%s1478_s4] ss:$0 sm:$0xff] }
 0x3ff   : > { %s299_s16 = scalar_lea.vmem [#allocation8], %s1363_s30  ;;  %s1431_s29 = scalar_lea.hbm %s1479_s5, %s856_s17 }
 0x400   : > { %s689_s1 = sshll.u32 %s299_s16, 4  ;;  %s671_s10 = scalar_lea.sflag [#allocation4], %s1360_s20  ;;  %s1433_s1 = int_to_ptr.vmem [resolvable:$true] %s689_s1 }
 0x401   : > { %s1121_s13 = scalar_lea.vmem %s1433_s1, 128  ;;  %s1206_s25 = smov [#allocation8]  }
 0x402   : > { %p1122_p1 = scmp.ne.s32.totalorder %s1433_s1, %s1121_s13  ;;  %s1125_s30 = sshll.u32 %s1206_s25, 4  ;;  %s1126_s30 = int_to_ptr.vmem [resolvable:$false] %s1125_s30 }
 0x403   : > { %s1127_s12 = scalar_lea.vmem %s1126_s30, 256  ;;  %p1128_p12 = scmp.lt.s32.totalorder %s1433_s1, %s1126_s30 }
 0x404   : > { %p1123_p2 = pnand %p1122_p1, %p1498_p0  ;;  %p1129_p3 = scmp.lt.s32.totalorder %s1127_s12, %s1121_s13 }
 0x406   : > { %p1124_p6 = pneg %p1123_p2  ;;  %p1130_p9 = por %p1129_p3, %p1128_p12 }
 0x408   : > { %p1131_p13 = pnand %p1130_p9, %p1124_p6 }
 0x4af   : > { %v662_v62 = vpop.f32.mrf.mxu0 }
 0x4b0   : > { %v663_v63 = vadd.f32 %v845_v61, %v662_v62 }
 0x4b1   : > { %v914_v0 = vpop.f32.mrf.mxu0 }
 0x4b2   : > { %668 = vst [vmem:[%s299_s16] sm:$0xff] %v663_v63 }
 0x4b3   : > { %v665_v1 = vpop.f32.mrf.mxu0 }
 0x4b4   : > { %1134 = shalt.err (!%p1131_p13)
}
 0x4b5   : > { %s1135_s17 = scalar_lea.hbm %s1431_s29, 128  ;;  %s1139_s18 = scalar_lea.hbm %s1479_s5, 256 }
 0x4b6   : > { %p1136_p5 = scmp.ne.s32.totalorder %s1431_s29, %s1135_s17  ;;  %p1140_p8 = scmp.lt.s32.totalorder %s1431_s29, %s1479_s5 }
 0x4b7   : > { %p1141_p7 = scmp.lt.s32.totalorder %s1139_s18, %s1135_s17 }
 0x4b8   : > { %p1137_p10 = pnand %p1136_p5, %p1498_p0 }
 0x4b9   : > { %p1142_p11 = por %p1141_p7, %p1140_p8 }
 0x4ba   : > { %p1138_p4 = pneg %p1137_p10 }
 0x4bc   : > { %p1143_p1 = pnand %p1142_p11, %p1138_p4 }
 0x4be   : > { %1146 = shalt.err (!%p1143_p1)
}
 0x4bf   : > { %926 = dma.vmem_to_hbm [thread:$0]  (%p1498_p0), %s1433_s1, 128, %s1431_s29, %s671_s10   ;;  %v915_v2 = vpop.f32.mrf.mxu0 }
 0x4c0 PF: > { %s714_s8 = sand.u32 1, %s1181_s21   ;;  %p1499_p2 = scmp.ne.s32.totalorder %s1487_s28, 0 }
 0x4c1   : > { %p1500_p6 = scmp.ge.s32.totalorder %s1193_s24, 2  ;;  %s715_s16 = scalar_lea.sflag [#allocation4], %s714_s8 }
 0x4c3   : > { %p942_p12 = pnand %p1500_p6, %p1499_p2 }
 0x4c5   : > { %p943_p3 = pneg %p942_p12 }
 0x4c7   : > { %1172 = dma.done.wait (%p943_p3), %s715_s16, 128  }
 0x4c8   : > { %1174 = vsyncadd (%p943_p3), %s715_s16, 4294967168  ;;  %s724_s7 = scalar_lea.sflag [#allocation10], %s714_s8 }
 0x4c9   : > { %1176 = dma.done.wait (%p943_p3), %s724_s7, 128  }
 0x4ca   : > { %1178 = vsyncadd (%p943_p3), %s724_s7, 4294967168  ;;  %p24_p0 = scmp.ge.s32.totalorder %s1314_s26, 4   ;;  %s1501_s21 = smov %s1185_s22 }
 0x4cb   : > { %s1502_s22 = smov %s1189_s23  ;;  %s1503_s23 = smov %s1323_s9 }
 0x4cc   : > { %s1504_s24 = smov %s1314_s26  ;;  %26 = sbr.rel (!%p24_p0) target bundleno = 10 (0xa), region = 110 }
 0x4d1   :  { %729 = vsyncpa [#allocation3], 1 }
 0x4d2   :  { %731 = vsyncpa [#allocation3 + $0x1], 1 }
 0x4d3   :  { %732 = vsyncpa [#allocation6], 1 }
 0x4d4   :  { %733 = vsyncpa [#allocation4], 1 }
 0x4d5   :  { %735 = vsyncpa [#allocation4 + $0x1], 1 }
 0x4d6   :  { %736 = vsyncpa [#allocation10], 1 }
 0x4d7   :  { %738 = vsyncpa [#allocation10 + $0x1], 1 }

// kernel: tpu_custom_call.1
= control target key start
LH: loop header
LB: loop body
LE: loop exit
PB: predicated region body
PF: predicated region fallthrough
CT: control target
= control target key end

     0   :  { %s1474_s0 = inlined_call_operand.hbm [shape: f32[16,32], index: 0, kind: input, shape index: {}]   ;;  %s1475_s1 = inlined_call_operand.hbm [shape: bf16[32,384], index: 1, kind: input, shape index: {}]   ;;  %s1476_s2 = inlined_call_operand.vmem [shape: f32[1,384], index: 2, kind: input, shape index: {}]   ;;  %s1477_s3 = inlined_call_operand.hbm [shape: bf16[128,128], index: 3, kind: input, shape index: {}]   ;;  %s1478_s4 = inlined_call_operand.vmem [shape: f32[1,128], index: 4, kind: input, shape index: {}]   ;;  %s1479_s5 = inlined_call_operand.hbm [shape: f32[16,128], index: 5, kind: output, shape index: {0}]   ;;  %s1480_s6 = inlined_call_operand.hbm [shape: f32[2,8,8], index: 6, kind: output, shape index: {1}]  }
   0x1   :  { %1485 = sst [smem:[#allocation15_spill]] %s1475_s1 }
   0x2   :  { %12 = vsyncpa [#allocation3], 0 }
   0x3   :  { %14 = vsyncpa [#allocation3 + $0x1], 0 }
   0x4   :  { %15 = vsyncpa [#allocation6], 0 }
   0x5   :  { %16 = vsyncpa [#allocation4], 0 }
   0x6   :  { %18 = vsyncpa [#allocation4 + $0x1], 0 }
   0x7   :  { %19 = vsyncpa [#allocation10], 0 }
   0x8   :  { %21 = vsyncpa [#allocation10 + $0x1], 0  ;;  %s1242_s21 = smov 0   ;;  %s1244_s22 = smov 0  }
   0x9   :  { %s1246_s23 = smov 0   ;;  %s1248_s24 = smov 0  }
   0xa LB: > { %s1263_s25 = sadd.s32 4294967295, %s1193_s24   ;;  %s823_s26 = sadd.s32 4294967294, %s1193_s24   ;;  %s1193_s24 = sphi %s1248_s24, %s1504_s24   ;;  %s1189_s23 = sphi %s1246_s23, %s1503_s23   ;;  %s1185_s22 = sphi %s1244_s22, %s1502_s22   ;;  %s1181_s21 = sphi %s1242_s21, %s1501_s21  }
   0xb   : > { %p47_p0 = scmp.ne.s32.totalorder %s1185_s22, %s1181_s21  ;;  %p1481_p1 = scmp.eq.s32.totalorder %s1263_s25, 0 }
   0xc   : > { %p161_p3 = scmp.eq.s32.totalorder %s823_s26, 1  ;;  %p824_p5 = scmp.ge.s32.totalorder %s1193_s24, 1 }
   0xd   : > { %p1272_p4 = por %p1481_p1, %p47_p0  ;;  %p194_p7 = scmp.lt.s32.totalorder %s1193_s24, 3 }
   0xe   : > { %p1277_p6 = por %p161_p3, %p47_p0  ;;  %s1195_s30 = smov [#allocation5]  }
   0xf   : > { %s1486_s27 = scalar_select %p1272_p4, 1, 0 }
  0x10   : > { %s1487_s28 = scalar_select %p1277_p6, 1, 0 }
  0x11   : > { %p1282_p8 = pnand %p824_p5, %p194_p7  ;;  %s206_s7 = sshll.u32 %s1195_s30, 4  ;;  %s207_s7 = int_to_ptr.vmem [resolvable:$true] %s206_s7 }
  0x12   : > { %s1196_s9 = smov [#allocation7]   ;;  %s1026_s11 = scalar_lea.vmem %s207_s7, 768 }
  0x13   : > { %s1488_s29 = scalar_select %p1282_p8, 1, 0 }
  0x14   : > { %p930_p9 = pneg %p1282_p8  ;;  %s222_s10 = sshll.u32 %s1196_s9, 4  ;;  %s223_s10 = int_to_ptr.vmem [resolvable:$true] %s222_s10 }
  0x15   : > { %p1027_p13 = scmp.ne.s32.totalorder %s207_s7, %s1026_s11  ;;  %p1034_p5 = scmp.lt.s32.totalorder %s207_s7, %s207_s7 }
  0x16   : > { %p1291_p11 = pnand %p930_p9, %p1481_p1  ;;  %p1035_p7 = scmp.lt.s32.totalorder %s1026_s11, %s1026_s11 }
  0x18   : > { %p1017_p12 = pneg %p1291_p11  ;;  %p1036_p10 = por %p1035_p7, %p1034_p5 }
  0x1a   : > { %p1029_p0 = pnand %p1027_p13, %p1017_p12 }
  0x1c   : > { %p1030_p3 = pneg %p1029_p0 }
  0x1e   : > { %p1037_p9 = pnand %p1036_p10, %p1030_p3 }
  0x20   : > { %1040 = shalt.err (!%p1037_p9)
}
  0x21   : > { %s1197_s12 = smov 192   ;;  %s1198_s13 = smov 12  }
  0x22   : > { %s1490_s1 = sld [smem:[#allocation15_spill]]  ;;  %s1052_s16 = scalar_lea.vmem %s223_s10, 1024 }
  0x23   : > { %p1053_p1 = scmp.ne.s32.totalorder %s223_s10, %s1052_s16  ;;  %p1060_p2 = scmp.lt.s32.totalorder %s223_s10, %s223_s10 }
  0x24   : > { %p1061_p6 = scmp.lt.s32.totalorder %s1052_s16, %s1052_s16 }
  0x25   : > { %p1055_p13 = pnand %p1053_p1, %p1017_p12 }
  0x26   : > { %p1062_p5 = por %p1061_p6, %p1060_p2 }
  0x27   : > { %p1056_p0 = pneg %p1055_p13 }
  0x28   : > { %933 = dma.hbm_to_vmem [thread:$0]  (!%p1291_p11), %s1490_s1, 768, %s207_s7, [#allocation6], %s1197_s12, %s1197_s12, %s1198_s13  }
  0x29   : > { %p1063_p10 = pnand %p1062_p5, %p1056_p0 }
  0x2b   : > { %1066 = shalt.err (!%p1063_p10)
}
  0x2c   : > { %s1199_s17 = smov 64   ;;  %s1200_s18 = smov 4  }
  0x2d   : > { %936 = dma.hbm_to_vmem [thread:$0]  (!%p1291_p11), %s1477_s3, 1024, %s223_s10, [#allocation6], %s1199_s17, %s1199_s17, %s1200_s18  }
  0x2e   : > { %s1314_s26 = sadd.s32 1, %s1193_s24   ;;  %s34_s7 = sadd.s32 1, %s1189_s23 }
  0x2f   : > { %s31_s30 = ssub.s32 %s1193_s24, %s1314_s26  ;;  %p41_p2 = scmp.ne.s32.totalorder %s1189_s23, %s1185_s22 }
  0x30   : > { %p32_p1 = scmp.eq.s32.totalorder %s31_s30, 0  ;;  %p42_p6 = scmp.eq.s32.totalorder %s1193_s24, 0 }
  0x31   : > { %p1491_p3 = scmp.eq.s32.totalorder %s1263_s25, 1  ;;  %p950_p9 = scmp.lt.s32.totalorder %s1193_s24, 2 }
  0x32   : > { %s1323_s9 = scalar_select %p32_p1, %s1189_s23, %s34_s7  }
  0x33   : > { %p43_p12 = por %p42_p6, %p41_p2  ;;  %p1327_p7 = por %p1491_p3, %p41_p2 }
  0x34   : > { %s239_s8 = sand.u32 1, %s1189_s23   ;;  %s829_s10 = sshll.u32 %s1193_s24, 7 }
  0x35   : > { %s1492_s11 = scalar_select %p1327_p7, 1, 0 }
  0x36   : > { %s828_s12 = sshll.u32 %s239_s8, 3  ;;  %s1337_s15 = scalar_lea.hbm %s1474_s0, %s829_s10 }
  0x37   : > { %s243_s16 = scalar_lea.vmem [#allocation2], %s828_s12  ;;  %p1339_p11 = pnand %p950_p9, %p43_p12 }
  0x38   : > { %s250_s17 = sshll.u32 %s243_s16, 4  ;;  %s240_s19 = scalar_lea.sflag [#allocation3], %s239_s8  ;;  %s251_s17 = int_to_ptr.vmem [resolvable:$true] %s250_s17 }
  0x39   : > { %s1067_s20 = scalar_lea.hbm %s1337_s15, 128  ;;  %p1069_p0 = pneg %p1339_p11 }
  0x3a   : > { %p1068_p13 = scmp.ne.s32.totalorder %s1337_s15, %s1067_s20  ;;  %s1072_s10 = scalar_lea.hbm %s1474_s0, 256 }
  0x3b   : > { %p1073_p1 = scmp.lt.s32.totalorder %s1337_s15, %s1474_s0  ;;  %p1074_p2 = scmp.lt.s32.totalorder %s1072_s10, %s1067_s20 }
  0x3c   : > { %p1070_p5 = pnand %p1069_p0, %p1068_p13 }
  0x3d   : > { %p1075_p6 = por %p1074_p2, %p1073_p1 }
  0x3e   : > { %p1071_p10 = pneg %p1070_p5 }
  0x40   : > { %p1076_p12 = pnand %p1075_p6, %p1071_p10 }
  0x42   : > { %1079 = shalt.err (!%p1076_p12)
}
  0x43   : > { %s1080_s14 = scalar_lea.vmem %s251_s17, 128  ;;  %s1201_s8 = smov [#allocation2]  }
  0x44   : > { %p1081_p3 = scmp.ne.s32.totalorder %s251_s17, %s1080_s14  ;;  %s1085_s16 = sshll.u32 %s1201_s8, 4  ;;  %s1086_s16 = int_to_ptr.vmem [resolvable:$false] %s1085_s16 }
  0x45   : > { %s1087_s1 = scalar_lea.vmem %s1086_s16, 256  ;;  %p1088_p13 = scmp.lt.s32.totalorder %s251_s17, %s1086_s16 }
  0x46   : > { %p1083_p9 = pnand %p1081_p3, %p1069_p0  ;;  %p1089_p5 = scmp.lt.s32.totalorder %s1087_s1, %s1080_s14 }
  0x48   : > { %p1084_p7 = pneg %p1083_p9  ;;  %p1090_p4 = por %p1089_p5, %p1088_p13 }
  0x4a   : > { %p1091_p8 = pnand %p1090_p4, %p1084_p7 }
  0x4c   : > { %1094 = shalt.err (!%p1091_p8)
}
  0x4d   : > { %940 = dma.hbm_to_vmem [thread:$0]  (!%p1339_p11), %s1337_s15, 128, %s251_s17, %s240_s19  }
  0x4e   : > { %p1494_p10 = scmp.ne.s32.totalorder %s1488_s29, 0 }
  0x4f   : > { %s1360_s20 = sand.u32 (!%p1494_p10), 1, %s1185_s22   ;;  %p1495_p4 = scmp.ne.s32.totalorder (!%p1494_p10), %s1486_s27, 0 }
  0x50   : > { %259 = sbr.rel (%p1494_p10) target bundleno = 1216 (0x4c0), region = 40  ;;  %s1363_s30 = sshll.u32 (!%p1494_p10), %s1360_s20, 3 }
  0x51   : > { %s262_s1 = scalar_lea.sflag (!%p1494_p10), [#allocation3], %s1360_s20  ;;  %s265_s7 = scalar_lea.vmem (!%p1494_p10), [#allocation2], %s1363_s30 }
  0x55   : > { %1164 = dma.done.wait (%p1495_p4), %s262_s1, 128  }
  0x56   : > { %1166 = vsyncadd (%p1495_p4), %s262_s1, 4294967168  ;;  %p1496_p8 = scmp.eq.s32.totalorder %s1263_s25, 0 }
  0x58   : > { %1168 = dma.done.wait (%p1496_p8), [#allocation6], 1792   ;;  %p1497_p7 = pmov %p1496_p8 }
  0x59   : > { %v1202_v0 = vmov 0   ;;  %v1203_v1 = vmov 0.0   ;;  %v995_v2 = vld [vmem:[#allocation5 + $0x1c] ss:$12 sps:$4 sm:$0xff]   ;;  %v997_v3 = vld [vmem:[#allocation5 + $0x18] ss:$12 sps:$4 sm:$0xff]   ;;  %v320_v10 = vlaneseq }
  0x5a   : > { %1170 = vsyncadd (%p1497_p7), [#allocation6], 4294965504  ;;  %403 = vmatprep.mubr.bf16.mxu1 %v1202_v0  ;;  %896 = vmatprep.subr.bf16.mxu0 %v1203_v1  ;;  %v998_v4 = vld [vmem:[#allocation5 + $0x4] ss:$12 sps:$4 sm:$0xff]   ;;  %v1000_v5 = vld [vmem:[#allocation5] ss:$12 sps:$4 sm:$0xff]  }
  0x5b   : > { %383 = vmatprep.subr.bf16.mxu1 %v995_v2  ;;  %v308_v6 = vld [vmem:[%s265_s7] sm:$0xff]  ;;  %vm367_vm0 = vcmask 261120   ;;  %v1001_v7 = vld [vmem:[#allocation5 + $0x20] ss:$12 sps:$4 sm:$0xff]   ;;  %vm1204_vm1 = vmmov 0   ;;  %v321_v11 = vshrl.u32 %v320_v10, 7 }
  0x5c   : > { %384 = vmatpush1.bf16.msra.mxu1 %v997_v3  ;;  %v309_v8 = vpack.c.bf16 %v308_v6, %v308_v6  ;;  %v1002_v9 = vld [vmem:[#allocation5 + $0x8] ss:$12 sps:$4 sm:$0xff]   ;;  %912 = vmatprep.mubr.msk.bf16.mxu0 %vm1204_vm1, %v1203_v1  ;;  %v318_v13 = vld [vmem:[%s1476_s2] sm:$0x7]  ;;  %vm512_vm2 = vcmask 1043456   ;;  %vm495_vm3 = vcmask 64512  }
  0x5d   : > { %385 = vmatprep.subr.bf16.mxu1 %v998_v4  ;;  %v326_v12 = vsub.s32 1, %v321_v11  ;;  %v322_v15 = vsub.s32 0, %v321_v11  ;;  %v330_v25 = vsub.s32 2, %v321_v11  ;;  %v1003_v44 = vld [vmem:[#allocation7 + $0x38] sm:$0xff]   ;;  %v1004_v45 = vld [vmem:[#allocation7 + $0x30] sm:$0xff]   ;;  %v1005_v46 = vld [vmem:[#allocation7 + $0x28] sm:$0xff]  }
  0x5e   : > { %897 = vmatpush3.bf16.msra.mxu0 %v1003_v44  ;;  %v1006_v47 = vld [vmem:[#allocation7 + $0x20] sm:$0xff]   ;;  %v1007_v48 = vld [vmem:[#allocation7 + $0x18] sm:$0xff]   ;;  %v1008_v49 = vld [vmem:[#allocation7 + $0x10] sm:$0xff]   ;;  %s306_s15 = scalar_lea.vmem [#allocation9], %s1363_s30  ;;  %s856_s17 = sshll.u32 %s1263_s25, 7 }
  0x5f   : > { %v327_v14 = vrot.slane %v318_v13, %v326_v12  ;;  %v323_v19 = vrot.slane %v318_v13, %v322_v15  ;;  %v331_v26 = vrot.slane %v318_v13, %v330_v25  ;;  %898 = vmatprep.subr.bf16.mxu0 %v1203_v1  ;;  %v1009_v50 = vld [vmem:[#allocation7 + $0x8] sm:$0xff]   ;;  %v1010_v55 = vld [vmem:[#allocation7] sm:$0xff]   ;;  %s700_s10 = scalar_lea.hbm %s1480_s6, %s856_s17  ;;  %s702_s13 = sshll.u32 %s306_s15, 4  ;;  %s703_s13 = int_to_ptr.vmem [resolvable:$true] %s702_s13 }
  0x60   : > { %386 = vmatpush1.bf16.msra.mxu1 %v1000_v5  ;;  %s676_s12 = scalar_lea.sflag [#allocation10], %s1360_s20  ;;  %s1095_s14 = scalar_lea.vmem %s703_s13, 128 }
  0x61   : > { %876 = vmatprep.subr.bf16.mxu1 %v1203_v1  ;;  %p1096_p11 = scmp.ne.s32.totalorder %s703_s13, %s1095_s14  ;;  %p1498_p0 = scmp.ne.s32.totalorder %s1492_s11, 0 }
  0x62   : > { %899 = vmatpush3.bf16.msra.mxu0 %v1004_v45  ;;  %s1205_s8 = smov [#allocation9]  }
  0x63   : > { %842 = vmatmul.mubr.msk.bf16.vlgmr.msra.gmra.mxu1 %vm367_vm0, %v309_v8  ;;  %900 = vmatprep.subr.bf16.mxu0 %v1203_v1  ;;  %p1097_p1 = pnand %p1096_p11, %p1498_p0  ;;  %s1099_s16 = sshll.u32 %s1205_s8, 4  ;;  %s1100_s16 = int_to_ptr.vmem [resolvable:$false] %s1099_s16 }
  0x64   : > { %877 = vmatpush3.bf16.msra.mxu1 %v1001_v7  ;;  %880 = vmatprep.mubr.msk.bf16.mxu1 %vm1204_vm1, %v1203_v1  ;;  %s1101_s1 = scalar_lea.vmem %s1100_s16, 256  ;;  %p1102_p6 = scmp.lt.s32.totalorder %s703_s13, %s1100_s16 }
  0x65   : > { %878 = vmatprep.subr.bf16.mxu1 %v1203_v1  ;;  %p1098_p2 = pneg %p1097_p1  ;;  %p1103_p12 = scmp.lt.s32.totalorder %s1101_s1, %s1095_s14 }
  0x66   : > { %901 = vmatpush3.bf16.msra.mxu0 %v1005_v46 }
  0x67   : > { %902 = vmatprep.subr.bf16.mxu0 %v1203_v1  ;;  %p1104_p3 = por %p1103_p12, %p1102_p6 }
  0x68   : > { %879 = vmatpush3.bf16.msra.mxu1 %v1002_v9 }
  0x69   : > { %884 = vmatprep.subr.bf16.mxu1 %v1203_v1  ;;  %p1105_p9 = pnand %p1104_p3, %p1098_p2 }
  0x6a   : > { %903 = vmatpush3.bf16.msra.mxu0 %v1006_v47 }
  0x6b   : > { %881 = vmatmul.mubr.msk.bf16.vlgmr.msra.gmra.mxu1 %vm367_vm0, %v309_v8  ;;  %904 = vmatprep.subr.bf16.mxu0 %v1203_v1 }
  0x6c   : > { %886 = vmatprep.mubr.msk.bf16.mxu1 %vm1204_vm1, %v1203_v1 }
  0x6e   : > { %905 = vmatpush3.bf16.msra.mxu0 %v1007_v48 }
  0x6f   : > { %906 = vmatprep.subr.bf16.mxu0 %v1203_v1 }
  0x72   : > { %907 = vmatpush3.bf16.msra.mxu0 %v1008_v49 }
  0x73   : > { %908 = vmatprep.subr.bf16.mxu0 %v1203_v1 }
  0x76   : > { %909 = vmatpush3.bf16.msra.mxu0 %v1009_v50 }
  0x77   : > { %910 = vmatprep.subr.bf16.mxu0 %v1203_v1 }
  0x7a   : > { %911 = vmatpush3.bf16.msra.mxu0 %v1010_v55 }
 0x123   : > { %v405_v16 = vpop.f32.mrf.mxu1 }
 0x124   : > { %v406_v23 = vadd.f32 %v405_v16, %v323_v19 }
 0x125   : > { %v407_v17 = vpop.f32.mrf.mxu1 }
 0x126   : > { %v408_v18 = vadd.f32 %v407_v17, %v327_v14  ;;  %v452_v24 = vpack.c.bf16 %v406_v23, %v406_v23 }
 0x127   : > { %v409_v20 = vpop.f32.mrf.mxu1 }
 0x128   : > { %v453_v21 = vpack.c.bf16 %v408_v18, %v408_v18 }
 0x129   : > { %v410_v22 = vpop.f32.mrf.mxu1 }
 0x12a   : > { %885 = vmatpush3.bf16.xpose.msra.mxu1 %v453_v21 }
 0x12b   : > { %890 = vmatprep.subr.bf16.mxu1 %v1203_v1  ;;  %v446_v27 = vpop.f32.mrf.mxu1 }
 0x12c   : > { %v447_v28 = vadd.f32 %v446_v27, %v331_v26 }
 0x12d   : > { %v882_v29 = vpop.f32.mrf.mxu1 }
 0x12e   : > { %v454_v30 = vpack.c.bf16 %v447_v28, %v447_v28 }
 0x12f   : > { %v449_v31 = vpop.f32.mrf.mxu1 }
 0x130   : > { %v514_v32 = vsel %vm512_vm2, %v454_v30, 0 }
 0x131   : > { %887 = vmatmul.mubr.bf16.vlgmr.msra.gmra.mxu1 %v452_v24  ;;  %v883_v33 = vpop.f32.mrf.mxu1 }
 0x132   : > { %892 = vmatprep.mubr.msk.bf16.mxu1 %vm1204_vm1, %v1203_v1  ;;  %891 = vmatpush3.bf16.msra.mxu1 %v514_v32 }
 0x1f1   : > { %v489_v34 = vpop.f32.mrf.mxu1 }
 0x1f2   : > { %v496_v35 = vsel %vm495_vm3, %v489_v34, -inf }
 0x1f3   : > { %497 = vmax.xlane.f32.xlu0 %v496_v35  ;;  %v888_v36 = vpop.f32.mrf.mxu1 }
 0x1f5   : > { %v492_v37 = vpop.f32.mrf.mxu1 }
 0x1f7   : > { %v889_v38 = vpop.f32.mrf.mxu1 }
 0x27c   : > { %v498_v39 = vpop.xlane.xlu0 %497 }
 0x27d   : > { %v499_v40 = vsub.f32 %v489_v34, %v498_v39 }
 0x27f   : > { %v500_v41 = vmul.f32 1.442695, %v499_v40 }
 0x281   : > { %1011 = vpow2.f32 %v500_v41 }
 0x28e   : > { %v1012_v42 = vpop.eup %1011 }
 0x28f   : > { %v502_v43 = vsel %vm495_vm3, %v1012_v42, 0.0 }
 0x290   : > { %503 = vadd.xlane.f32.xlu0 %v502_v43 }
 0x319   : > { %v504_v51 = vpop.xlane.xlu0 %503 }
 0x31a   : > { %1013 = vrcp.f32 %v504_v51 }
 0x327   : > { %v1014_v52 = vpop.eup %1013 }
 0x328   : > { %v507_v53 = vmul.f32 %v1014_v52, %v1012_v42 }
 0x32a   : > { %v508_v54 = vpack.c.bf16 %v507_v53, %v507_v53  ;;  %669 = vst.msk [vmem:[%s306_s15] sm:$0xff] %vm495_vm3, %v507_v53 }
 0x32c   : > { %893 = vmatmul.mubr.msk.bf16.vlgmr.msra.gmra.mxu1 %vm495_vm3, %v508_v54 }
 0x3ec   : > { %v550_v56 = vpop.f32.mrf.mxu1 }
 0x3ed   : > { %v556_v57 = vpack.c.bf16 %v550_v56, %v550_v56 }
 0x3ee   : > { %v894_v58 = vpop.f32.mrf.mxu1 }
 0x3ef   : > { %913 = vmatmul.mubr.bf16.vlgmr.msra.gmra.mxu0 %v556_v57 }
 0x3f0   : > { %v553_v59 = vpop.f32.mrf.mxu1 }
 0x3f2   : > { %v895_v60 = vpop.f32.mrf.mxu1 }
 0x3f3   : > { %1108 = shalt.err (!%p1105_p9)
}
 0x3f4   : > { %s1109_s7 = scalar_lea.hbm %s700_s10, 128  ;;  %s1113_s15 = scalar_lea.hbm %s1480_s6, 256 }
 0x3f5   : > { %p1110_p13 = scmp.ne.s32.totalorder %s700_s10, %s1109_s7  ;;  %p1114_p4 = scmp.lt.s32.totalorder %s700_s10, %s1480_s6 }
 0x3f6   : > { %p1115_p8 = scmp.lt.s32.totalorder %s1113_s15, %s1109_s7 }
 0x3f7   : > { %p1111_p5 = pnand %p1110_p13, %p1498_p0 }
 0x3f8   : > { %p1116_p7 = por %p1115_p8, %p1114_p4 }
 0x3f9   : > { %p1112_p10 = pneg %p1111_p5 }
 0x3fb   : > { %p1117_p11 = pnand %p1116_p7, %p1112_p10 }
 0x3fd   : > { %1120 = shalt.err (!%p1117_p11)
}
 0x3fe   : > { %927 = dma.vmem_to_hbm [thread:$0]  (%p1498_p0), %s703_s13, 128, %s700_s10, %s676_s12   ;;  %v845_v61 = vld [vmem:[%s1478_s4] ss:$0 sm:$0xff] }
 0x3ff   : > { %s299_s16 = scalar_lea.vmem [#allocation8], %s1363_s30  ;;  %s1431_s29 = scalar_lea.hbm %s1479_s5, %s856_s17 }
 0x400   : > { %s689_s1 = sshll.u32 %s299_s16, 4  ;;  %s671_s10 = scalar_lea.sflag [#allocation4], %s1360_s20  ;;  %s1433_s1 = int_to_ptr.vmem [resolvable:$true] %s689_s1 }
 0x401   : > { %s1121_s13 = scalar_lea.vmem %s1433_s1, 128  ;;  %s1206_s25 = smov [#allocation8]  }
 0x402   : > { %p1122_p1 = scmp.ne.s32.totalorder %s1433_s1, %s1121_s13  ;;  %s1125_s30 = sshll.u32 %s1206_s25, 4  ;;  %s1126_s30 = int_to_ptr.vmem [resolvable:$false] %s1125_s30 }
 0x403   : > { %s1127_s12 = scalar_lea.vmem %s1126_s30, 256  ;;  %p1128_p12 = scmp.lt.s32.totalorder %s1433_s1, %s1126_s30 }
 0x404   : > { %p1123_p2 = pnand %p1122_p1, %p1498_p0  ;;  %p1129_p3 = scmp.lt.s32.totalorder %s1127_s12, %s1121_s13 }
 0x406   : > { %p1124_p6 = pneg %p1123_p2  ;;  %p1130_p9 = por %p1129_p3, %p1128_p12 }
 0x408   : > { %p1131_p13 = pnand %p1130_p9, %p1124_p6 }
 0x4af   : > { %v662_v62 = vpop.f32.mrf.mxu0 }
 0x4b0   : > { %v663_v63 = vadd.f32 %v845_v61, %v662_v62 }
 0x4b1   : > { %v914_v0 = vpop.f32.mrf.mxu0 }
 0x4b2   : > { %668 = vst [vmem:[%s299_s16] sm:$0xff] %v663_v63 }
 0x4b3   : > { %v665_v1 = vpop.f32.mrf.mxu0 }
 0x4b4   : > { %1134 = shalt.err (!%p1131_p13)
}
 0x4b5   : > { %s1135_s17 = scalar_lea.hbm %s1431_s29, 128  ;;  %s1139_s18 = scalar_lea.hbm %s1479_s5, 256 }
 0x4b6   : > { %p1136_p5 = scmp.ne.s32.totalorder %s1431_s29, %s1135_s17  ;;  %p1140_p8 = scmp.lt.s32.totalorder %s1431_s29, %s1479_s5 }
 0x4b7   : > { %p1141_p7 = scmp.lt.s32.totalorder %s1139_s18, %s1135_s17 }
 0x4b8   : > { %p1137_p10 = pnand %p1136_p5, %p1498_p0 }
 0x4b9   : > { %p1142_p11 = por %p1141_p7, %p1140_p8 }
 0x4ba   : > { %p1138_p4 = pneg %p1137_p10 }
 0x4bc   : > { %p1143_p1 = pnand %p1142_p11, %p1138_p4 }
 0x4be   : > { %1146 = shalt.err (!%p1143_p1)
}
 0x4bf   : > { %926 = dma.vmem_to_hbm [thread:$0]  (%p1498_p0), %s1433_s1, 128, %s1431_s29, %s671_s10   ;;  %v915_v2 = vpop.f32.mrf.mxu0 }
 0x4c0 PF: > { %s714_s8 = sand.u32 1, %s1181_s21   ;;  %p1499_p2 = scmp.ne.s32.totalorder %s1487_s28, 0 }
 0x4c1   : > { %p1500_p6 = scmp.ge.s32.totalorder %s1193_s24, 2  ;;  %s715_s16 = scalar_lea.sflag [#allocation4], %s714_s8 }
 0x4c3   : > { %p942_p12 = pnand %p1500_p6, %p1499_p2 }
 0x4c5   : > { %p943_p3 = pneg %p942_p12 }
 0x4c7   : > { %1172 = dma.done.wait (%p943_p3), %s715_s16, 128  }
 0x4c8   : > { %1174 = vsyncadd (%p943_p3), %s715_s16, 4294967168  ;;  %s724_s7 = scalar_lea.sflag [#allocation10], %s714_s8 }
 0x4c9   : > { %1176 = dma.done.wait (%p943_p3), %s724_s7, 128  }
 0x4ca   : > { %1178 = vsyncadd (%p943_p3), %s724_s7, 4294967168  ;;  %p24_p0 = scmp.ge.s32.totalorder %s1314_s26, 4   ;;  %s1501_s21 = smov %s1185_s22 }
 0x4cb   : > { %s1502_s22 = smov %s1189_s23  ;;  %s1503_s23 = smov %s1323_s9 }
 0x4cc   : > { %s1504_s24 = smov %s1314_s26  ;;  %26 = sbr.rel (!%p24_p0) target bundleno = 10 (0xa), region = 110 }
 0x4d1   :  { %729 = vsyncpa [#allocation3], 1 }
 0x4d2   :  { %731 = vsyncpa [#allocation3 + $0x1], 1 }
 0x4d3   :  { %732 = vsyncpa [#allocation6], 1 }
 0x4d4   :  { %733 = vsyncpa [#allocation4], 1 }
 0x4d5   :  { %735 = vsyncpa [#allocation4 + $0x1], 1 }
 0x4d6   :  { %736 = vsyncpa [#allocation10], 1 }
 0x4d7   :  { %738 = vsyncpa [#allocation10 + $0x1], 1 }

</bundles_post_ra>
